<compile_context>
chip_gen: v5e
topology: v5e:2x2
jax: 0.10.0
libtpu: 0.0.40
codegen_flags: <defaults>
</compile_context>

<pallas_src>
import jax
import jax.numpy as jnp
from jax.experimental import pallas as pl
from jax.experimental.pallas import tpu as pltpu

_LANE = 128
_SUBLANE = 8
_TARGET_BLOCK_BYTES = 2 * 1024 * 1024   # ~2 MiB per input block per step


def _num_tensorcores_per_chip():
    """2 on v7x (2 TensorCores share one Pallas grid), else 1."""
    try:
        kind = jax.devices()[0].device_kind.lower()
    except Exception:
        return 1
    if "v7" in kind or "7x" in kind:
        return 2
    return 1


def _make_kernel(inner):
    """Kernel body with the reduction-axis extent baked in."""

    def kernel(x_ref, t_ref, out_ref, acc_p, acc_t, acc_pt):
        j = pl.program_id(1)          # position along the reduction axis

        @pl.when(j == 0)
        def _init():
            acc_p[...] = jnp.zeros_like(acc_p)
            acc_t[...] = jnp.zeros_like(acc_t)
            acc_pt[...] = jnp.zeros_like(acc_pt)

        x = x_ref[...].astype(jnp.float32)
        t = t_ref[...].astype(jnp.float32)
        # Single-EUP sigmoid: sigmoid(x) = 0.5 * tanh(x / 2) + 0.5 (exact identity).
        p = 0.5 * jnp.tanh(0.5 * x) + 0.5

        # Layout-preserving reshape (sublane axis split in chunks of 8), then a
        # pure-VALU tree add into vreg-sized resident accumulators.
        p3 = p.reshape(-1, _SUBLANE, _LANE)
        t3 = t.reshape(-1, _SUBLANE, _LANE)
        acc_p[...] += jnp.sum(p3, axis=0)
        acc_t[...] += jnp.sum(t3, axis=0)
        acc_pt[...] += jnp.sum(p3 * t3, axis=0)

        @pl.when(j == inner - 1)
        def _fini():
            # Single unmasked (24, 128) store per slice; final reductions in glue.
            out_ref[0] = jnp.concatenate(
                [acc_p[...], acc_t[...], acc_pt[...]], axis=0)

    return kernel


def _tversky_sums(x_flat, t_flat):
    """Returns (sum(sigmoid(x)), sum(t), sum(sigmoid(x) * t)) as f32 scalars."""
    n = x_flat.shape[0]

    # Block rows scale with the widest input dtype -> ~2 MiB per block per step.
    itemsize = max(jnp.dtype(x_flat.dtype).itemsize,
                   jnp.dtype(t_flat.dtype).itemsize)
    max_rows = max(_SUBLANE, _TARGET_BLOCK_BYTES // (_LANE * itemsize))

    rows_needed = -(-n // _LANE)
    if rows_needed <= max_rows:
        block_rows = max(_SUBLANE,
                         ((rows_needed + _SUBLANE - 1) // _SUBLANE) * _SUBLANE)
        total_blocks = 1
    else:
        block_rows = max_rows
        total_blocks = -(-rows_needed // block_rows)

    # Megacore split only where there are 2 TensorCores (v7x); exact otherwise.
    num_slices = 2 if (_num_tensorcores_per_chip() >= 2 and total_blocks >= 2) else 1
    inner = -(-total_blocks // num_slices)
    covered_rows = num_slices * inner * block_rows
    covered = covered_rows * _LANE
    pad = covered - n

    if pad:
        # Zero padding: sigmoid(0) == 0.5 exactly, target 0 contributes nothing;
        # corrected in the glue below.  No OOB grid blocks exist after padding.
        x_flat = jnp.pad(x_flat, (0, pad))
        t_flat = jnp.pad(t_flat, (0, pad))

    x2 = x_flat.reshape(covered_rows, _LANE)
    t2 = t_flat.reshape(covered_rows, _LANE)

    kernel = _make_kernel(inner)
    in_spec = pl.BlockSpec((block_rows, _LANE), lambda p, j: (p * inner + j, 0))

    out = pl.pallas_call(
        kernel,
        out_shape=jax.ShapeDtypeStruct((num_slices, 3 * _SUBLANE, _LANE),
                                       jnp.float32),
        grid_spec=pltpu.PrefetchScalarGridSpec(
            num_scalar_prefetch=0,
            grid=(num_slices, inner),
            in_specs=[in_spec, in_spec],
            out_specs=pl.BlockSpec((1, 3 * _SUBLANE, _LANE),
                                   lambda p, j: (p, 0, 0)),
            scratch_shapes=[pltpu.VMEM((_SUBLANE, _LANE), jnp.float32)
                            for _ in range(3)],
        ),
        compiler_params=pltpu.CompilerParams(
            dimension_semantics=("parallel", "arbitrary")),
    )(x2, t2)

    # Tiny final reduction in JAX glue: (num_slices, 3, 8, 128) -> (3,).
    sums = jnp.sum(out.reshape(num_slices, 3, _SUBLANE, _LANE), axis=(0, 2, 3))
    sum_p = sums[0] - 0.5 * pad      # exact correction for zero-padded logits
    return sum_p, sums[1], sums[2]


def tversky_loss(inputs, targets, smooth=1.0, alpha=0.5, beta=0.5):
    """Matches TverskyLoss.forward: sigmoid(inputs), flatten, Tversky index."""
    sum_p, sum_t, sum_pt = _tversky_sums(inputs.reshape(-1), targets.reshape(-1))
    tp = sum_pt               # sum(p * t)
    fp = sum_p - sum_pt       # sum((1 - t) * p)
    fn = sum_t - sum_pt       # sum(t * (1 - p))
    tversky = (tp + smooth) / (tp + alpha * fp + beta * fn + smooth)
    return 1.0 - tversky


def _tversky_loss_ref(inputs, targets, smooth=1.0, alpha=0.5, beta=0.5):
    p = jax.nn.sigmoid(inputs.astype(jnp.float32)).reshape(-1)
    t = targets.astype(jnp.float32).reshape(-1)
    tp = jnp.sum(p * t)
    fp = jnp.sum((1.0 - t) * p)
    fn = jnp.sum(t * (1.0 - p))
    return 1.0 - (tp + smooth) / (tp + alpha * fp + beta * fn + smooth)


if __name__ == "__main__":
    key = jax.random.PRNGKey(0)
    keys = jax.random.split(key, 6)

    checks = []

    # 1) Typical NCHW logits / binary targets, lane-aligned.
    x1 = jax.random.normal(keys[0], (2, 4, 16, 16), dtype=jnp.float32)
    t1 = (jax.random.uniform(keys[1], (2, 4, 16, 16)) > 0.5).astype(jnp.float32)
    checks.append((x1, t1))

    # 2) Unaligned element count -> exercises the zero-pad + -0.5*pad correction.
    x2 = jax.random.normal(keys[2], (1, 3, 7, 5), dtype=jnp.float32)
    t2 = (jax.random.uniform(keys[3], (1, 3, 7, 5)) > 0.5).astype(jnp.float32)
    checks.append((x2, t2))

    # 3) Larger input, mixed dtypes (f32 logits, bf16 targets).
    x3 = jax.random.normal(keys[4], (2, 4, 256, 256), dtype=jnp.float32)
    t3 = (jax.random.uniform(keys[5], (2, 4, 256, 256)) > 0.5).astype(jnp.bfloat16)
    checks.append((x3, t3))

    for x, t in checks:
        loss = jax.block_until_ready(
            tversky_loss(x, t, smooth=1.0, alpha=0.5, beta=0.5))
        ref = _tversky_loss_ref(x, t, smooth=1.0, alpha=0.5, beta=0.5)
        assert jnp.allclose(loss, ref, atol=1e-5, rtol=1e-4), (x.shape, loss, ref)

    print("KERNEL_OK")
</pallas_src>

<mosaic_0001>
module attributes {stable_mosaic.version = 11 : i64} {
  func.func @kernel(%arg0: i32, %arg1: i32, %arg2: memref<16x128xf32, #tpu.memory_space<vmem>>, %arg3: memref<16x128xf32, #tpu.memory_space<vmem>>, %arg4: memref<1x24x128xf32, #tpu.memory_space<vmem>>, %arg5: memref<8x128xf32, #tpu.memory_space<vmem>>, %arg6: memref<8x128xf32, #tpu.memory_space<vmem>>, %arg7: memref<8x128xf32, #tpu.memory_space<vmem>>) attributes {dimension_semantics = [#tpu.dimension_semantics<parallel>, #tpu.dimension_semantics<arbitrary>], iteration_bounds = array<i64: 1, 1>, scalar_prefetch = 0 : i64, scratch_operands = 3 : i64, tpu.core_type = #tpu.core_type<tc>, window_params = [{transform_indices = @transform_0, window_bounds = array<i64: 16, 128>}, {transform_indices = @transform_1, window_bounds = array<i64: 16, 128>}, {transform_indices = @transform_2, window_bounds = array<i64: 1, 24, 128>}]} {
    %c0_i32 = arith.constant 0 : i32
    %0 = arith.cmpi eq, %arg1, %c0_i32 : i32
    %1 = arith.extui %0 : i1 to i32
    %c0_i32_0 = arith.constant 0 : i32
    %2 = arith.cmpi ne, %1, %c0_i32_0 : i32
    scf.if %2 {
      %cst_23 = arith.constant 0.000000e+00 : f32
      %30 = vector.broadcast %cst_23 : f32 to vector<8x128xf32>
      %c0_24 = arith.constant 0 : index
      %c0_25 = arith.constant 0 : index
      %31 = vector.load %arg5[%c0_24, %c0_25] : memref<8x128xf32, #tpu.memory_space<vmem>>, vector<8x128xf32>
      tpu.vector_store %arg5[%c0_24, %c0_25], %30 {strides = array<i32>} : memref<8x128xf32, #tpu.memory_space<vmem>>, vector<8x128xf32>,
      %cst_26 = arith.constant 0.000000e+00 : f32
      %32 = vector.broadcast %cst_26 : f32 to vector<8x128xf32>
      %c0_27 = arith.constant 0 : index
      %c0_28 = arith.constant 0 : index
      %33 = vector.load %arg6[%c0_27, %c0_28] : memref<8x128xf32, #tpu.memory_space<vmem>>, vector<8x128xf32>
      tpu.vector_store %arg6[%c0_27, %c0_28], %32 {strides = array<i32>} : memref<8x128xf32, #tpu.memory_space<vmem>>, vector<8x128xf32>,
      %cst_29 = arith.constant 0.000000e+00 : f32
      %34 = vector.broadcast %cst_29 : f32 to vector<8x128xf32>
      %c0_30 = arith.constant 0 : index
      %c0_31 = arith.constant 0 : index
      %35 = vector.load %arg7[%c0_30, %c0_31] : memref<8x128xf32, #tpu.memory_space<vmem>>, vector<8x128xf32>
      tpu.vector_store %arg7[%c0_30, %c0_31], %34 {strides = array<i32>} : memref<8x128xf32, #tpu.memory_space<vmem>>, vector<8x128xf32>,
    } else {
    }
    %c0 = arith.constant 0 : index
    %c0_1 = arith.constant 0 : index
    %3 = vector.load %arg2[%c0, %c0_1] : memref<16x128xf32, #tpu.memory_space<vmem>>, vector<16x128xf32>
    %c0_2 = arith.constant 0 : index
    %c0_3 = arith.constant 0 : index
    %4 = vector.load %arg3[%c0_2, %c0_3] : memref<16x128xf32, #tpu.memory_space<vmem>>, vector<16x128xf32>
    %cst = arith.constant 5.000000e-01 : f32
    %5 = vector.broadcast %cst : f32 to vector<16x128xf32>
    %6 = arith.mulf %5, %3 : vector<16x128xf32>
    %7 = math.tanh %6 : vector<16x128xf32>
    %cst_4 = arith.constant 5.000000e-01 : f32
    %8 = vector.broadcast %cst_4 : f32 to vector<16x128xf32>
    %9 = arith.mulf %8, %7 : vector<16x128xf32>
    %cst_5 = arith.constant 5.000000e-01 : f32
    %10 = vector.broadcast %cst_5 : f32 to vector<16x128xf32>
    %11 = arith.addf %9, %10 : vector<16x128xf32>
    %12 = vector.shape_cast %11 : vector<16x128xf32> to vector<2x8x128xf32>
    %13 = vector.shape_cast %4 : vector<16x128xf32> to vector<2x8x128xf32>
    %c0_6 = arith.constant 0 : index
    %c0_7 = arith.constant 0 : index
    %14 = vector.load %arg5[%c0_6, %c0_7] : memref<8x128xf32, #tpu.memory_space<vmem>>, vector<8x128xf32>
    %cst_8 = arith.constant dense<0.000000e+00> : vector<8x128xf32>
    %15 = vector.multi_reduction <add>, %12, %cst_8 [0] : vector<2x8x128xf32> to vector<8x128xf32>
    %16 = arith.addf %14, %15 : vector<8x128xf32>
    %c0_9 = arith.constant 0 : index
    %c0_10 = arith.constant 0 : index
    %17 = vector.load %arg5[%c0_9, %c0_10] : memref<8x128xf32, #tpu.memory_space<vmem>>, vector<8x128xf32>
    tpu.vector_store %arg5[%c0_9, %c0_10], %16 {strides = array<i32>} : memref<8x128xf32, #tpu.memory_space<vmem>>, vector<8x128xf32>,
    %c0_11 = arith.constant 0 : index
    %c0_12 = arith.constant 0 : index
    %18 = vector.load %arg6[%c0_11, %c0_12] : memref<8x128xf32, #tpu.memory_space<vmem>>, vector<8x128xf32>
    %cst_13 = arith.constant dense<0.000000e+00> : vector<8x128xf32>
    %19 = vector.multi_reduction <add>, %13, %cst_13 [0] : vector<2x8x128xf32> to vector<8x128xf32>
    %20 = arith.addf %18, %19 : vector<8x128xf32>
    %c0_14 = arith.constant 0 : index
    %c0_15 = arith.constant 0 : index
    %21 = vector.load %arg6[%c0_14, %c0_15] : memref<8x128xf32, #tpu.memory_space<vmem>>, vector<8x128xf32>
    tpu.vector_store %arg6[%c0_14, %c0_15], %20 {strides = array<i32>} : memref<8x128xf32, #tpu.memory_space<vmem>>, vector<8x128xf32>,
    %c0_16 = arith.constant 0 : index
    %c0_17 = arith.constant 0 : index
    %22 = vector.load %arg7[%c0_16, %c0_17] : memref<8x128xf32, #tpu.memory_space<vmem>>, vector<8x128xf32>
    %23 = arith.mulf %12, %13 : vector<2x8x128xf32>
    %cst_18 = arith.constant dense<0.000000e+00> : vector<8x128xf32>
    %24 = vector.multi_reduction <add>, %23, %cst_18 [0] : vector<2x8x128xf32> to vector<8x128xf32>
    %25 = arith.addf %22, %24 : vector<8x128xf32>
    %c0_19 = arith.constant 0 : index
    %c0_20 = arith.constant 0 : index
    %26 = vector.load %arg7[%c0_19, %c0_20] : memref<8x128xf32, #tpu.memory_space<vmem>>, vector<8x128xf32>
    tpu.vector_store %arg7[%c0_19, %c0_20], %25 {strides = array<i32>} : memref<8x128xf32, #tpu.memory_space<vmem>>, vector<8x128xf32>,
    %c0_i32_21 = arith.constant 0 : i32
    %27 = arith.cmpi eq, %arg1, %c0_i32_21 : i32
    %28 = arith.extui %27 : i1 to i32
    %c0_i32_22 = arith.constant 0 : i32
    %29 = arith.cmpi ne, %28, %c0_i32_22 : i32
    scf.if %29 {
      %c0_23 = arith.constant 0 : index
      %c0_24 = arith.constant 0 : index
      %30 = vector.load %arg5[%c0_23, %c0_24] : memref<8x128xf32, #tpu.memory_space<vmem>>, vector<8x128xf32>
      %c0_25 = arith.constant 0 : index
      %c0_26 = arith.constant 0 : index
      %31 = vector.load %arg6[%c0_25, %c0_26] : memref<8x128xf32, #tpu.memory_space<vmem>>, vector<8x128xf32>
      %c0_27 = arith.constant 0 : index
      %c0_28 = arith.constant 0 : index
      %32 = vector.load %arg7[%c0_27, %c0_28] : memref<8x128xf32, #tpu.memory_space<vmem>>, vector<8x128xf32>
      %33 = tpu.concatenate %30, %31, %32 in 0 : vector<8x128xf32>, vector<8x128xf32>, vector<8x128xf32> -> vector<24x128xf32>
      %c0_29 = arith.constant 0 : index
      %c0_30 = arith.constant 0 : index
      %c0_31 = arith.constant 0 : index
      %34 = vector.load %arg4[%c0_29, %c0_30, %c0_31] : memref<1x24x128xf32, #tpu.memory_space<vmem>>, vector<1x24x128xf32>
      %35 = vector.shape_cast %34 : vector<1x24x128xf32> to vector<24x128xf32>
      %36 = vector.shape_cast %33 : vector<24x128xf32> to vector<1x24x128xf32>
      tpu.vector_store %arg4[%c0_29, %c0_30, %c0_31], %36 {strides = array<i32>} : memref<1x24x128xf32, #tpu.memory_space<vmem>>, vector<1x24x128xf32>,
    } else {
    }
    return
  }
  func.func @transform_0(%arg0: i32, %arg1: i32) -> (i32, i32) {
    %c1_i32 = arith.constant 1 : i32
    %0 = arith.muli %arg0, %c1_i32 : i32
    %1 = arith.addi %0, %arg1 : i32
    %c0_i32 = arith.constant 0 : i32
    %c0_i32_0 = arith.constant 0 : i32
    return %1, %c0_i32 : i32, i32
  }
  func.func @transform_1(%arg0: i32, %arg1: i32) -> (i32, i32) {
    %c1_i32 = arith.constant 1 : i32
    %0 = arith.muli %arg0, %c1_i32 : i32
    %1 = arith.addi %0, %arg1 : i32
    %c0_i32 = arith.constant 0 : i32
    %c0_i32_0 = arith.constant 0 : i32
    return %1, %c0_i32 : i32, i32
  }
  func.func @transform_2(%arg0: i32, %arg1: i32) -> (i32, i32, i32) {
    %c0_i32 = arith.constant 0 : i32
    %c0_i32_0 = arith.constant 0 : i32
    %c0_i32_1 = arith.constant 0 : i32
    return %arg0, %c0_i32, %c0_i32_0 : i32, i32, i32
  }
}

</mosaic_0001>

<bundles_post_ra>
// kernel: tpu_custom_call.1
= control target key start
LH: loop header
LB: loop body
LE: loop exit
PB: predicated region body
PF: predicated region fallthrough
CT: control target
= control target key end

     0   :  { %7 = vsyncpa [#allocation6], 0  ;;  %s243_s0 = inlined_call_operand.hbm [shape: f32[16,128], index: 0, kind: input, shape index: {}]   ;;  %s244_s1 = inlined_call_operand.hbm [shape: f32[16,128], index: 1, kind: input, shape index: {}]   ;;  %s245_s2 = inlined_call_operand.hbm [shape: f32[1,24,128], index: 2, kind: output, shape index: {}]  }
   0x1   :  { %8 = vsyncpa [#allocation9], 0 }
   0x2   :  { %9 = vsyncpa [#allocation7], 0  ;;  %s18_s11 = sshll.u32 %s243_s0, 4  ;;  %s205_s12 = smov [#allocation5]   ;;  %s19_s11 = int_to_ptr.hbm [resolvable:$true] %s18_s11 }
   0x3   :  { %s20_s13 = sshll.u32 %s205_s12, 4  ;;  %s35_s16 = sshll.u32 %s244_s1, 4  ;;  %s21_s13 = int_to_ptr.vmem [resolvable:$true] %s20_s13  ;;  %s36_s16 = int_to_ptr.hbm [resolvable:$true] %s35_s16 }
   0x4   :  { %s206_s17 = smov 128   ;;  %s207_s18 = smov 8  }
   0x5   :  { %26 = dma.hbm_to_vmem [thread:$0]  %s19_s11, 256, %s21_s13, [#allocation6], %s206_s17, %s206_s17, %s207_s18  }
   0x6   :  { %s208_s19 = smov [#allocation8]  }
   0x7   :  { %s37_s20 = sshll.u32 %s208_s19, 4  ;;  %s38_s20 = int_to_ptr.vmem [resolvable:$true] %s37_s20 }
   0x8   :  { %43 = dma.hbm_to_vmem [thread:$0]  %s36_s16, 256, %s38_s20, [#allocation9], %s206_s17, %s206_s17, %s207_s18  }
   0x9   :  { %199 = dma.done.wait [#allocation6], 256  }
   0xa   :  { %200 = vsyncadd [#allocation6], 4294967040 }
   0xb   :  { %201 = dma.done.wait [#allocation9], 256  }
   0xc   :  { %202 = vsyncadd [#allocation9], 4294967040  ;;  %v63_v0 = vld [vmem:[#allocation5] sm:$0xff]  ;;  %v64_v1 = vld [vmem:[#allocation5 + $0x8] sm:$0xff]  ;;  %s209_s0 = smov [#allocation10]   ;;  %s104_s23 = sshll.u32 %s245_s2, 4  ;;  %s105_s23 = int_to_ptr.hbm [resolvable:$true] %s104_s23 }
   0xd   :  { %v67_v2 = vmul.f32 0.5, %v63_v0  ;;  %v68_v3 = vmul.f32 0.5, %v64_v1  ;;  %v65_v4 = vld [vmem:[#allocation8] sm:$0xff]  ;;  %v66_v5 = vld [vmem:[#allocation8 + $0x8] sm:$0xff]  ;;  %s102_s1 = sshll.u32 %s209_s0, 4  ;;  %s103_s1 = int_to_ptr.vmem [resolvable:$true] %s102_s1 }
   0xe   :  { %v80_v6 = vadd.f32 %v66_v5, %v65_v4 }
   0xf   :  { %123 = vtanh.f32 %v67_v2 }
  0x10   :  { %125 = vtanh.f32 %v68_v3  ;;  %96 = vst [vmem:[#allocation10 + $0x8] sm:$0xff] %v80_v6 }
  0x15   :  { %v124_v7 = vpop.eup %123 }
  0x16   :  { %v126_v8 = vpop.eup %125  ;;  %v71_v9 = vmul.f32 0.5, %v124_v7 }
  0x17   :  { %v72_v10 = vmul.f32 0.5, %v126_v8 }
  0x18   :  { %v73_v11 = vadd.f32 0.5, %v71_v9 }
  0x19   :  { %v74_v12 = vadd.f32 0.5, %v72_v10 }
  0x1a   :  { %v84_v13 = vmul.f32 %v73_v11, %v65_v4 }
  0x1b   :  { %v76_v14 = vadd.f32 %v74_v12, %v73_v11  ;;  %v85_v15 = vmul.f32 %v74_v12, %v66_v5 }
  0x1d   :  { %95 = vst [vmem:[#allocation10] sm:$0xff] %v76_v14  ;;  %v86_v16 = vadd.f32 %v85_v15, %v84_v13 }
  0x1f   :  { %97 = vst [vmem:[#allocation10 + $0x10] sm:$0xff] %v86_v16 }
  0x20   :  { %110 = dma.vmem_to_hbm [thread:$0]  %s103_s1, 384, %s105_s23, [#allocation7], %s206_s17, %s206_s17, %s207_s18  }
  0x21   :  { %203 = dma.done.wait [#allocation7], 384  }
  0x22   :  { %204 = vsyncadd [#allocation7], 4294966912 }
  0x23   :  { %115 = vsyncpa [#allocation6], 1 }
  0x24   :  { %116 = vsyncpa [#allocation9], 1 }
  0x25   :  { %117 = vsyncpa [#allocation7], 1 }

</bundles_post_ra>
